<compile_context>
chip_gen: v5e
topology: v5e:2x2
jax: 0.10.0
libtpu: 0.0.40
codegen_flags: <defaults>
</compile_context>

<pallas_src>
import jax
import jax.numpy as jnp
from jax.experimental import pallas as pl
from jax.experimental.pallas import tpu as pltpu


LANE = 128        # lane width: output columns are padded to a multiple of this
TM_MAX = 512      # max rows per tile (multiple of 8; safe for VMEM on v5e/v6e/v7x)


# ---------------------------------------------------------------------------
# Pallas kernel: fused  y = x @ W + b   on one (TM, Npad) tile
# ---------------------------------------------------------------------------
def _linear_kernel(x_ref, w_ref, b_ref, o_ref):
    # x_ref: (TM, K) bf16, w_ref: (K, Npad) bf16, b_ref: (1, Npad) f32,
    # o_ref: (TM, Npad) f32.  MXU matmul with f32 accumulation.
    acc = jnp.dot(x_ref[...], w_ref[...], preferred_element_type=jnp.float32)
    o_ref[...] = (acc + b_ref[...]).astype(o_ref.dtype)


def linear_pallas(x2d, w_pad, b_pad, n_out):
    """Compute (x2d @ w_pad + b_pad)[:, :n_out] with an M-tiled Pallas kernel.

    x2d:   (M, K)  any float dtype (cast to bf16 for the matmul)
    w_pad: (K, Npad) bf16, Npad a multiple of 128 (zero-padded columns)
    b_pad: (1, Npad) f32
    """
    M, K = x2d.shape
    Kw, Np = w_pad.shape
    assert K == Kw, (K, Kw)
    assert Np % LANE == 0, Np

    # Tile rows: full-array block for small M, otherwise TM_MAX (multiple of 8).
    tm = M if M <= TM_MAX else TM_MAX
    grid = (pl.cdiv(M, tm),)

    out = pl.pallas_call(
        _linear_kernel,
        out_shape=jax.ShapeDtypeStruct((M, Np), jnp.float32),
        grid_spec=pltpu.PrefetchScalarGridSpec(
            num_scalar_prefetch=0,
            grid=grid,
            in_specs=[
                # x: streamed tile-by-tile over M (auto double-buffered).
                pl.BlockSpec((tm, K), lambda i: (i, 0)),
                # W, b: constant block index -> DMA'd once, stay resident.
                pl.BlockSpec((K, Np), lambda i: (0, 0)),
                pl.BlockSpec((1, Np), lambda i: (0, 0)),
            ],
            out_specs=pl.BlockSpec((tm, Np), lambda i: (i, 0)),
        ),
        compiler_params=pltpu.CompilerParams(
            # M tiles are independent: shard across both TCs on v7x.
            dimension_semantics=("parallel",),
            vmem_limit_bytes=32 * 1024 * 1024,
        ),
    )(x2d.astype(jnp.bfloat16), w_pad, b_pad)

    return out[:, :n_out]


# ---------------------------------------------------------------------------
# Parameter construction (deterministic, synthetic)
# ---------------------------------------------------------------------------
def init_params(key, vocab_size, hidden_size, entity_size):
    k_emb, k_aw, k_ab, k_ow, k_ob = jax.random.split(key, 5)
    scale = (1.0 / hidden_size) ** 0.5

    # TODO(synk): stand-in for the pretrained DebertaV2Model backbone.
    emb = jax.random.normal(k_emb, (vocab_size, hidden_size), jnp.float32) * 0.02

    # asp_ffnn = nn.Linear(hidden_size, entity_size) -> stored (H, Npad) bf16
    asp_w = jax.random.normal(k_aw, (hidden_size, entity_size), jnp.float32) * scale
    asp_b = jax.random.normal(k_ab, (entity_size,), jnp.float32) * 0.01
    # opi_ffnn = nn.Linear(hidden_size, 3)           -> stored (H, Npad) bf16
    opi_w = jax.random.normal(k_ow, (hidden_size, 3), jnp.float32) * scale
    opi_b = jax.random.normal(k_ob, (3,), jnp.float32) * 0.01

    ent_pad = max(LANE, ((entity_size + LANE - 1) // LANE) * LANE)
    opi_pad = LANE  # 3 -> 128

    params = {
        "emb": emb,
        "asp_w": jnp.pad(asp_w, ((0, 0), (0, ent_pad - entity_size))).astype(jnp.bfloat16),
        "asp_b": jnp.pad(asp_b, (0, ent_pad - entity_size)).reshape(1, ent_pad),
        "opi_w": jnp.pad(opi_w, ((0, 0), (0, opi_pad - 3))).astype(jnp.bfloat16),
        "opi_b": jnp.pad(opi_b, (0, opi_pad - 3)).reshape(1, opi_pad),
    }
    return params


# ---------------------------------------------------------------------------
# FFNN forward (mirrors the PyTorch module's forward semantics)
# ---------------------------------------------------------------------------
def ffnn_forward(params, input_ids, attention_mask=None, token_type_ids=None,
                 answer="aspect", entity_size=4):
    # hidden_states = self._embedding(input_ids, ...)[0] -> (B, S, H)
    # TODO(synk): DebertaV2Model backbone replaced by deterministic embedding
    #             lookup (glue JAX); attention_mask / token_type_ids unused.
    hidden_states = jnp.take(params["emb"], input_ids, axis=0)  # (B, S, H)

    if answer == "aspect":
        # logits = self.asp_ffnn(hidden_states[:, 0, :]) -> (B, entity_size)
        cls = hidden_states[:, 0, :]                              # (B, H)
        logits = linear_pallas(cls, params["asp_w"], params["asp_b"], entity_size)
    elif answer == "opinion":
        # logits = self.opi_ffnn(hidden_states) -> (B, S, 3)
        B, S, H = hidden_states.shape
        flat = hidden_states.reshape(B * S, H)
        logits = linear_pallas(flat, params["opi_w"], params["opi_b"], 3)
        logits = logits.reshape(B, S, 3)
    else:
        raise ValueError(answer)

    return hidden_states, logits


# ---------------------------------------------------------------------------
if __name__ == "__main__":
    # Small shapes consistent with the module's forward:
    B, S, H = 2, 8, 32          # batch, seq, hidden_size
    ENTITY = 4                  # args.entity_size
    VOCAB = 64

    key = jax.random.PRNGKey(0)
    k_params, k_ids = jax.random.split(key)
    params = init_params(k_params, VOCAB, H, ENTITY)

    input_ids = jax.random.randint(k_ids, (B, S), 0, VOCAB, dtype=jnp.int32)
    attention_mask = jnp.ones((B, S), dtype=jnp.int32)
    token_type_ids = jnp.zeros((B, S), dtype=jnp.int32)

    # --- aspect mode ---
    hs_a, logits_asp = ffnn_forward(params, input_ids, attention_mask,
                                    token_type_ids, answer="aspect",
                                    entity_size=ENTITY)
    jax.block_until_ready(logits_asp)

    # --- opinion mode ---
    hs_o, logits_opi = ffnn_forward(params, input_ids, attention_mask,
                                    token_type_ids, answer="opinion",
                                    entity_size=ENTITY)
    jax.block_until_ready(logits_opi)

    # Pure-JAX reference (same bf16-input / f32-accumulate numerics)
    hs_ref = jnp.take(params["emb"], input_ids, axis=0)
    ref_asp = (jnp.dot(hs_ref[:, 0, :].astype(jnp.bfloat16), params["asp_w"],
                       preferred_element_type=jnp.float32)
               + params["asp_b"])[:, :ENTITY]
    ref_opi = (jnp.dot(hs_ref.reshape(B * S, H).astype(jnp.bfloat16),
                       params["opi_w"],
                       preferred_element_type=jnp.float32)
               + params["opi_b"])[:, :3].reshape(B, S, 3)

    assert hs_a.shape == (B, S, H)
    assert logits_asp.shape == (B, ENTITY)
    assert logits_opi.shape == (B, S, 3)
    assert jnp.allclose(logits_asp, ref_asp, atol=1e-3, rtol=1e-3)
    assert jnp.allclose(logits_opi, ref_opi, atol=1e-3, rtol=1e-3)

    print("KERNEL_OK")
</pallas_src>

<mosaic_0001>
module attributes {stable_mosaic.version = 11 : i64} {
  func.func @_linear_kernel(%arg0: i32, %arg1: memref<2x32xbf16, #tpu.memory_space<vmem>>, %arg2: memref<32x128xbf16, #tpu.memory_space<vmem>>, %arg3: memref<1x128xf32, #tpu.memory_space<vmem>>, %arg4: memref<2x128xf32, #tpu.memory_space<vmem>>) attributes {dimension_semantics = [#tpu.dimension_semantics<parallel>], iteration_bounds = array<i64: 1>, scalar_prefetch = 0 : i64, scratch_operands = 0 : i64, tpu.core_type = #tpu.core_type<tc>, window_params = [{transform_indices = @transform_0, window_bounds = array<i64: 2, 32>}, {pipeline_mode = #tpu.pipeline_mode<synchronous>, transform_indices = @transform_1, window_bounds = array<i64: 32, 128>}, {pipeline_mode = #tpu.pipeline_mode<synchronous>, transform_indices = @transform_2, window_bounds = array<i64: 1, 128>}, {transform_indices = @transform_3, window_bounds = array<i64: 2, 128>}]} {
    %c0 = arith.constant 0 : index
    %c0_0 = arith.constant 0 : index
    %0 = vector.load %arg1[%c0, %c0_0] : memref<2x32xbf16, #tpu.memory_space<vmem>>, vector<2x32xbf16>
    %c0_1 = arith.constant 0 : index
    %c0_2 = arith.constant 0 : index
    %1 = vector.load %arg2[%c0_1, %c0_2] : memref<32x128xbf16, #tpu.memory_space<vmem>>, vector<32x128xbf16>
    %cst = arith.constant dense<0.000000e+00> : vector<2x128xf32>
    %2 = tpu.matmul %0, %1, %cst {dimension_numbers = #tpu.dot_dimension_numbers<[1], [0], [0], [1], [0, 0, 1, 1], [], []>} : vector<2x32xbf16>, vector<32x128xbf16>, vector<2x128xf32> -> vector<2x128xf32>
    %c0_3 = arith.constant 0 : index
    %c0_4 = arith.constant 0 : index
    %3 = vector.load %arg3[%c0_3, %c0_4] : memref<1x128xf32, #tpu.memory_space<vmem>>, vector<1x128xf32>
    %4 = vector.broadcast %3 : vector<1x128xf32> to vector<2x128xf32>
    %5 = arith.addf %2, %4 : vector<2x128xf32>
    %c0_5 = arith.constant 0 : index
    %c0_6 = arith.constant 0 : index
    %6 = vector.load %arg4[%c0_5, %c0_6] : memref<2x128xf32, #tpu.memory_space<vmem>>, vector<2x128xf32>
    tpu.vector_store %arg4[%c0_5, %c0_6], %5 {strides = array<i32>} : memref<2x128xf32, #tpu.memory_space<vmem>>, vector<2x128xf32>,
    return
  }
  func.func @transform_0(%arg0: i32) -> (i32, i32) {
    %c0_i32 = arith.constant 0 : i32
    %c0_i32_0 = arith.constant 0 : i32
    return %arg0, %c0_i32 : i32, i32
  }
  func.func @transform_1(%arg0: i32) -> (i32, i32) {
    %c0_i32 = arith.constant 0 : i32
    %c0_i32_0 = arith.constant 0 : i32
    %c0_i32_1 = arith.constant 0 : i32
    return %c0_i32, %c0_i32_0 : i32, i32
  }
  func.func @transform_2(%arg0: i32) -> (i32, i32) {
    %c0_i32 = arith.constant 0 : i32
    %c0_i32_0 = arith.constant 0 : i32
    %c0_i32_1 = arith.constant 0 : i32
    return %c0_i32, %c0_i32_0 : i32, i32
  }
  func.func @transform_3(%arg0: i32) -> (i32, i32) {
    %c0_i32 = arith.constant 0 : i32
    %c0_i32_0 = arith.constant 0 : i32
    return %arg0, %c0_i32 : i32, i32
  }
}

</mosaic_0001>

<bundles_post_ra>
// kernel: tpu_custom_call.1
= control target key start
LH: loop header
LB: loop body
LE: loop exit
PB: predicated region body
PF: predicated region fallthrough
CT: control target
= control target key end

     0   :  { %8 = vsyncpa [#allocation3], 0  ;;  %s235_s0 = inlined_call_operand.hbm [shape: bf16[2,32], index: 0, kind: input, shape index: {}]   ;;  %s236_s1 = inlined_call_operand.hbm [shape: bf16[32,128], index: 1, kind: input, shape index: {}]   ;;  %s237_s2 = inlined_call_operand.vmem [shape: f32[1,128], index: 2, kind: input, shape index: {}]   ;;  %s238_s3 = inlined_call_operand.hbm [shape: f32[2,128], index: 3, kind: output, shape index: {}]  }
   0x1   :  { %9 = vsyncpa [#allocation6], 0 }
   0x2   :  { %10 = vsyncpa [#allocation4], 0  ;;  %s16_s14 = sshll.u32 %s235_s0, 4  ;;  %s198_s15 = smov [#allocation2]   ;;  %s17_s14 = int_to_ptr.hbm [resolvable:$true] %s16_s14 }
   0x3   :  { %s18_s16 = sshll.u32 %s198_s15, 4  ;;  %s26_s19 = sshll.u32 %s236_s1, 4  ;;  %s19_s16 = int_to_ptr.vmem [resolvable:$true] %s18_s16  ;;  %s27_s19 = int_to_ptr.hbm [resolvable:$true] %s26_s19 }
   0x4   :  { %21 = dma.hbm_to_vmem [thread:$0]  %s17_s14, 16, %s19_s16, [#allocation3]  }
   0x5   :  { %s199_s20 = smov [#allocation5]   ;;  %s200_s22 = smov 64  }
   0x6   :  { %s28_s21 = sshll.u32 %s199_s20, 4  ;;  %s201_s23 = smov 4   ;;  %s29_s21 = int_to_ptr.vmem [resolvable:$true] %s28_s21 }
   0x7   :  { %34 = dma.hbm_to_vmem [thread:$0]  %s27_s19, 256, %s29_s21, [#allocation6], %s200_s22, %s200_s22, %s201_s23  }
   0x8   :  { %192 = dma.done.wait [#allocation3], 16  }
   0x9   :  { %193 = vsyncadd [#allocation3], 4294967280 }
   0xa   :  { %194 = dma.done.wait [#allocation6], 256  }
   0xb   :  { %195 = vsyncadd [#allocation6], 4294967040  ;;  %v113_v0 = vld [vmem:[#allocation5 + $0x8] sm:$0xff]  ;;  %v112_v1 = vld [vmem:[#allocation5] sm:$0xff]  ;;  %vm67_vm0 = vcmask 261120   ;;  %s202_s24 = smov [#allocation7]  }
   0xc   :  { %77 = vmatpush.bf16.msra.mxu0 %v113_v0  ;;  %v46_v2 = vld [vmem:[#allocation2] sm:$0x1]  ;;  %s90_s25 = sshll.u32 %s202_s24, 4  ;;  %s92_s28 = sshll.u32 %s238_s3, 4  ;;  %s91_s25 = int_to_ptr.vmem [resolvable:$true] %s90_s25  ;;  %s93_s28 = int_to_ptr.hbm [resolvable:$true] %s92_s28 }
   0xd   :  { %v119_v3 = vld [vmem:[%s237_s2] ss:$0 sm:$0xff] }
  0x10   :  { %78 = vmatpush.bf16.msra.mxu0 %v112_v1 }
  0x13   :  { %111 = vmatmul.msk.bf16.vlgmr.msra.gmra.mxu0 %vm67_vm0, %v46_v2 }
  0x90   :  { %v80_v4 = vpop.f32.mrf.mxu0 }
  0x91   :  { %v81_v5 = vadd.f32 %v119_v3, %v80_v4 }
  0x93   :  { %84 = vst [vmem:[#allocation7] sm:$0x3] %v81_v5 }
  0x94   :  { %95 = dma.vmem_to_hbm [thread:$0]  %s91_s25, 32, %s93_s28, [#allocation4]  }
  0x98   :  { %v82_v6 = vpop.f32.mrf.mxu0 }
  0x99   :  { %196 = dma.done.wait [#allocation4], 32  }
  0x9a   :  { %197 = vsyncadd [#allocation4], 4294967264 }
  0x9b   :  { %100 = vsyncpa [#allocation3], 1 }
  0x9c   :  { %101 = vsyncpa [#allocation6], 1 }
  0x9d   :  { %102 = vsyncpa [#allocation4], 1 }

</bundles_post_ra>
